<compile_context>
chip_gen: v7x
topology: tpu7x:2x2x1
jax: 0.10.0
libtpu: 0.0.40
codegen_flags: <defaults>
</compile_context>

<pallas_src>
import jax
import jax.numpy as jnp
import numpy as np
from jax.experimental import pallas as pl
from jax.experimental.pallas import tpu as pltpu


C_IN = 3                        # the module hard-codes Conv2d(3, 8, 1)
_TP_CAP = 16 * 1024             # pixel-axis chunk (lanes) for large images
_STEP_BYTES = 2 * 1024 * 1024   # per-grid-step input DMA target (~1-2 MB)
_TB_CAP = 128                   # bounds the resident sel / w_tiled blocks


# ----------------------------------------------------------------------------
# Kernel: one (batch-tile, pixel-chunk) grid step.
#   x_ref  : (TB*C, TP)    sublane-dense pixel tile (pixels on lanes)
#   wt_ref : (TB*C, NOUT)  w_eff tiled over the batch rows (constant block)
#   sel_ref: (TB, TB*C)    0/1 channel group-sum matrix (constant block)
#   b_ref  : (1, NOUT)     folded bias (constant block)
#   o_ref  : (TB, NOUT)    output rows for this batch tile
#   acc_ref: (TB*C, 1)     running per-row pixel sums (VMEM scratch)
# ----------------------------------------------------------------------------
def _multi_concat_kernel(x_ref, wt_ref, sel_ref, b_ref, o_ref, acc_ref):
    p = pl.program_id(1)

    @pl.when(p == 0)
    def _():
        acc_ref[...] = jnp.zeros_like(acc_ref)

    # Partial sum over this pixel chunk (XLU cross-lane reduce).
    acc_ref[...] += jnp.sum(x_ref[...], axis=1, keepdims=True)

    @pl.when(p == pl.num_programs(1) - 1)
    def _():
        # out[b, n] = sum_c acc[b*C + c] * (w_eff[c, n] / P) + b_eff[n]
        # Group-sum over the C rows of each batch element is one tiny MXU
        # matmul with a 0/1 selection matrix (no reshapes / strided loads).
        contrib = acc_ref[...] * wt_ref[...]                       # (TB*C, NOUT)
        out = jnp.dot(sel_ref[...], contrib,
                      preferred_element_type=jnp.float32) + b_ref[...]
        o_ref[...] = out.astype(o_ref.dtype)


def multi_concat_forward(x_nchw, params):
    """x_nchw: (N, 3, H, W) float32 -> (N, 1000) float32 (MultiConcatModel)."""
    (w1, b1, w2, b2, w3, b3, w4, b4, wfc, bfc) = params
    N, C, H, W = x_nchw.shape
    assert C == C_IN
    P = H * W

    # ---- one-time algebraic parameter fold (graph is affine) ---------------
    w3a, w3b = w3[:8], w3[8:]          # op3 consumes cat([x1, x2]) -> split rows
    wfc3, wfc4 = wfc[:8], wfc[8:]      # fc  consumes cat([x3, x4]) -> split rows
    w_eff = (w1 @ w3a + w2 @ w3b) @ wfc3 + w4 @ wfc4                  # (3, 1000)
    b_eff = (b1 @ w3a + b2 @ w3b + b3) @ wfc3 + b4 @ wfc4 + bfc       # (1, 1000)
    n_out = w_eff.shape[-1]
    w_eff = (w_eff / float(P)).astype(jnp.float32)   # fold 1/P pooling scale
    b_eff = b_eff.astype(jnp.float32)

    # ---- tiling -------------------------------------------------------------
    # Pixel-axis chunk: full P when small, else bounded 16K-lane chunks so the
    # input block size is independent of image resolution.
    if P <= _TP_CAP:
        tp, p_pad = P, P
    else:
        tp = _TP_CAP
        p_pad = pl.cdiv(P, tp) * tp

    # Batch tile: target ~1-2 MB of input DMA per grid step, capped so the
    # resident sel / w_tiled blocks stay small.
    tb_want = max(1, _STEP_BYTES // (C * tp * 4))
    tb_want = min(tb_want, _TB_CAP)
    if tb_want >= N:
        tb, n_pad = N, N                    # single batch step, full-dim block
    else:
        tb = max(8, (tb_want // 8) * 8)     # keep TB*C rows 8-sublane aligned
        n_pad = pl.cdiv(N, tb) * tb

    x = x_nchw
    if n_pad != N:
        x = jnp.pad(x, ((0, n_pad - N), (0, 0), (0, 0), (0, 0)))
    x2d = x.reshape(n_pad * C, P)           # sublane-dense; no transpose/copy
    if p_pad != P:
        # TODO(synk): rare path (P > 16K and not chunk-aligned) costs one
        # wrapper-side padded copy of x; zero pixels are exact for the mean.
        x2d = jnp.pad(x2d, ((0, 0), (0, p_pad - P)))

    w_tiled = jnp.tile(w_eff, (tb, 1))                                 # (tb*C, n_out)
    sel = (jnp.arange(tb)[:, None] ==
           (jnp.arange(tb * C)[None, :] // C)).astype(jnp.float32)    # (tb, tb*C)

    out = pl.pallas_call(
        _multi_concat_kernel,
        out_shape=jax.ShapeDtypeStruct((n_pad, n_out), jnp.float32),
        grid_spec=pltpu.PrefetchScalarGridSpec(
            num_scalar_prefetch=0,
            grid=(n_pad // tb, p_pad // tp),
            in_specs=[
                pl.BlockSpec((tb * C, tp), lambda i, p: (i, p)),      # pixels
                pl.BlockSpec((tb * C, n_out), lambda i, p: (0, 0)),   # w_tiled
                pl.BlockSpec((tb, tb * C), lambda i, p: (0, 0)),      # sel
                pl.BlockSpec((1, n_out), lambda i, p: (0, 0)),        # bias
            ],
            out_specs=pl.BlockSpec((tb, n_out), lambda i, p: (i, 0)),
            scratch_shapes=[pltpu.VMEM((tb * C, 1), jnp.float32)],
        ),
        compiler_params=pltpu.CompilerParams(
            dimension_semantics=("parallel", "arbitrary")),
    )(x2d, w_tiled, sel, b_eff)

    return out if n_pad == N else out[:N]


# ----------------------------------------------------------------------------
# Deterministic parameters matching the PyTorch module's shapes, stored as
# right-multiply matrices (Cin, Cout):
#   op1/op2/op4: Conv2d(3, 8, 1)   op3: Conv2d(16, 8, 1)   fc: Linear(16, 1000)
# ----------------------------------------------------------------------------
def make_params(key):
    ks = jax.random.split(key, 10)
    s = 0.1
    w1 = s * jax.random.normal(ks[0], (3, 8), jnp.float32)
    b1 = s * jax.random.normal(ks[1], (1, 8), jnp.float32)
    w2 = s * jax.random.normal(ks[2], (3, 8), jnp.float32)
    b2 = s * jax.random.normal(ks[3], (1, 8), jnp.float32)
    w3 = s * jax.random.normal(ks[4], (16, 8), jnp.float32)
    b3 = s * jax.random.normal(ks[5], (1, 8), jnp.float32)
    w4 = s * jax.random.normal(ks[6], (3, 8), jnp.float32)
    b4 = s * jax.random.normal(ks[7], (1, 8), jnp.float32)
    wfc = s * jax.random.normal(ks[8], (16, 1000), jnp.float32)
    bfc = s * jax.random.normal(ks[9], (1, 1000), jnp.float32)
    return (w1, b1, w2, b2, w3, b3, w4, b4, wfc, bfc)


# Pure-JAX reference mirroring the PyTorch graph op-by-op (no folding).
def reference_forward(x_nchw, params):
    (w1, b1, w2, b2, w3, b3, w4, b4, wfc, bfc) = params
    x = jnp.transpose(x_nchw, (0, 2, 3, 1))                      # NHWC
    x1 = jnp.einsum("nhwc,cd->nhwd", x, w1) + b1[0]
    x2 = jnp.einsum("nhwc,cd->nhwd", x, w2) + b2[0]
    cat1 = jnp.concatenate([x1, x2], axis=-1)
    x3 = jnp.einsum("nhwc,cd->nhwd", cat1, w3) + b3[0]
    x4 = jnp.einsum("nhwc,cd->nhwd", x, w4) + b4[0]
    cat2 = jnp.concatenate([x3, x4], axis=-1)
    pooled = jnp.mean(cat2, axis=(1, 2))                         # (N, 16)
    return pooled @ wfc + bfc[0]                                 # (N, 1000)


if __name__ == "__main__":
    key = jax.random.PRNGKey(0)
    kx, kp = jax.random.split(key)

    # Small shapes consistent with the module: N=2, C=3 (required by op1), H=W=16.
    x = jax.random.normal(kx, (2, 3, 16, 16), jnp.float32)
    params = make_params(kp)

    fwd = jax.jit(multi_concat_forward)
    out = jax.block_until_ready(fwd(x, params))

    ref = reference_forward(x, params)
    np.testing.assert_allclose(np.asarray(out), np.asarray(ref),
                               rtol=1e-4, atol=1e-5)
    assert out.shape == (2, 1000) and out.dtype == jnp.float32
    print("KERNEL_OK")
</pallas_src>

<mosaic_0001>
module attributes {stable_mosaic.version = 11 : i64} {
  func.func @_multi_concat_kernel(%arg0: i32, %arg1: i32, %arg2: memref<6x256xf32, #tpu.memory_space<vmem>>, %arg3: memref<6x1000xf32, #tpu.memory_space<vmem>>, %arg4: memref<2x6xf32, #tpu.memory_space<vmem>>, %arg5: memref<1x1000xf32, #tpu.memory_space<vmem>>, %arg6: memref<2x1000xf32, #tpu.memory_space<vmem>>, %arg7: memref<6x1xf32, #tpu.memory_space<vmem>>) attributes {dimension_semantics = [#tpu.dimension_semantics<parallel>, #tpu.dimension_semantics<arbitrary>], iteration_bounds = array<i64: 1, 1>, scalar_prefetch = 0 : i64, scratch_operands = 1 : i64, tpu.core_type = #tpu.core_type<tc>, window_params = [{transform_indices = @transform_0, window_bounds = array<i64: 6, 256>}, {pipeline_mode = #tpu.pipeline_mode<synchronous>, transform_indices = @transform_1, window_bounds = array<i64: 6, 1000>}, {pipeline_mode = #tpu.pipeline_mode<synchronous>, transform_indices = @transform_2, window_bounds = array<i64: 2, 6>}, {pipeline_mode = #tpu.pipeline_mode<synchronous>, transform_indices = @transform_3, window_bounds = array<i64: 1, 1000>}, {transform_indices = @transform_4, window_bounds = array<i64: 2, 1000>}]} {
    %c0_i32 = arith.constant 0 : i32
    %0 = arith.cmpi eq, %arg1, %c0_i32 : i32
    %1 = arith.extui %0 : i1 to i32
    %c0_i32_0 = arith.constant 0 : i32
    %2 = arith.cmpi ne, %1, %c0_i32_0 : i32
    scf.if %2 {
      %cst_8 = arith.constant 0.000000e+00 : f32
      %12 = vector.broadcast %cst_8 : f32 to vector<6x1xf32>
      %c0_9 = arith.constant 0 : index
      %c0_10 = arith.constant 0 : index
      %13 = vector.load %arg7[%c0_9, %c0_10] : memref<6x1xf32, #tpu.memory_space<vmem>>, vector<6x1xf32>
      tpu.vector_store %arg7[%c0_9, %c0_10], %12 {strides = array<i32>} : memref<6x1xf32, #tpu.memory_space<vmem>>, vector<6x1xf32>,
    } else {
    }
    %c0 = arith.constant 0 : index
    %c0_1 = arith.constant 0 : index
    %3 = vector.load %arg7[%c0, %c0_1] : memref<6x1xf32, #tpu.memory_space<vmem>>, vector<6x1xf32>
    %c0_2 = arith.constant 0 : index
    %c0_3 = arith.constant 0 : index
    %4 = vector.load %arg2[%c0_2, %c0_3] : memref<6x256xf32, #tpu.memory_space<vmem>>, vector<6x256xf32>
    %cst = arith.constant dense<0.000000e+00> : vector<6xf32>
    %5 = vector.multi_reduction <add>, %4, %cst [1] : vector<6x256xf32> to vector<6xf32>
    %6 = vector.shape_cast %5 : vector<6xf32> to vector<6x1xf32>
    %7 = arith.addf %3, %6 : vector<6x1xf32>
    %c0_4 = arith.constant 0 : index
    %c0_5 = arith.constant 0 : index
    %8 = vector.load %arg7[%c0_4, %c0_5] : memref<6x1xf32, #tpu.memory_space<vmem>>, vector<6x1xf32>
    tpu.vector_store %arg7[%c0_4, %c0_5], %7 {strides = array<i32>} : memref<6x1xf32, #tpu.memory_space<vmem>>, vector<6x1xf32>,
    %c0_i32_6 = arith.constant 0 : i32
    %9 = arith.cmpi eq, %arg1, %c0_i32_6 : i32
    %10 = arith.extui %9 : i1 to i32
    %c0_i32_7 = arith.constant 0 : i32
    %11 = arith.cmpi ne, %10, %c0_i32_7 : i32
    scf.if %11 {
      %c0_8 = arith.constant 0 : index
      %c0_9 = arith.constant 0 : index
      %12 = vector.load %arg7[%c0_8, %c0_9] : memref<6x1xf32, #tpu.memory_space<vmem>>, vector<6x1xf32>
      %c0_10 = arith.constant 0 : index
      %c0_11 = arith.constant 0 : index
      %13 = vector.load %arg3[%c0_10, %c0_11] : memref<6x1000xf32, #tpu.memory_space<vmem>>, vector<6x1000xf32>
      %14 = vector.broadcast %12 : vector<6x1xf32> to vector<6x1000xf32>
      %15 = arith.mulf %14, %13 : vector<6x1000xf32>
      %c0_12 = arith.constant 0 : index
      %c0_13 = arith.constant 0 : index
      %16 = vector.load %arg4[%c0_12, %c0_13] : memref<2x6xf32, #tpu.memory_space<vmem>>, vector<2x6xf32>
      %cst_14 = arith.constant dense<0.000000e+00> : vector<2x1000xf32>
      %17 = tpu.matmul %16, %15, %cst_14 {dimension_numbers = #tpu.dot_dimension_numbers<[1], [0], [0], [1], [0, 0, 1, 1], [], []>} : vector<2x6xf32>, vector<6x1000xf32>, vector<2x1000xf32> -> vector<2x1000xf32>
      %c0_15 = arith.constant 0 : index
      %c0_16 = arith.constant 0 : index
      %18 = vector.load %arg5[%c0_15, %c0_16] : memref<1x1000xf32, #tpu.memory_space<vmem>>, vector<1x1000xf32>
      %19 = vector.broadcast %18 : vector<1x1000xf32> to vector<2x1000xf32>
      %20 = arith.addf %17, %19 : vector<2x1000xf32>
      %c0_17 = arith.constant 0 : index
      %c0_18 = arith.constant 0 : index
      %21 = vector.load %arg6[%c0_17, %c0_18] : memref<2x1000xf32, #tpu.memory_space<vmem>>, vector<2x1000xf32>
      tpu.vector_store %arg6[%c0_17, %c0_18], %20 {strides = array<i32>} : memref<2x1000xf32, #tpu.memory_space<vmem>>, vector<2x1000xf32>,
    } else {
    }
    return
  }
  func.func @transform_0(%arg0: i32, %arg1: i32) -> (i32, i32) {
    %c0_i32 = arith.constant 0 : i32
    return %arg0, %arg1 : i32, i32
  }
  func.func @transform_1(%arg0: i32, %arg1: i32) -> (i32, i32) {
    %c0_i32 = arith.constant 0 : i32
    %c0_i32_0 = arith.constant 0 : i32
    %c0_i32_1 = arith.constant 0 : i32
    return %c0_i32, %c0_i32_0 : i32, i32
  }
  func.func @transform_2(%arg0: i32, %arg1: i32) -> (i32, i32) {
    %c0_i32 = arith.constant 0 : i32
    %c0_i32_0 = arith.constant 0 : i32
    %c0_i32_1 = arith.constant 0 : i32
    return %c0_i32, %c0_i32_0 : i32, i32
  }
  func.func @transform_3(%arg0: i32, %arg1: i32) -> (i32, i32) {
    %c0_i32 = arith.constant 0 : i32
    %c0_i32_0 = arith.constant 0 : i32
    %c0_i32_1 = arith.constant 0 : i32
    return %c0_i32, %c0_i32_0 : i32, i32
  }
  func.func @transform_4(%arg0: i32, %arg1: i32) -> (i32, i32) {
    %c0_i32 = arith.constant 0 : i32
    %c0_i32_0 = arith.constant 0 : i32
    return %arg0, %c0_i32 : i32, i32
  }
}

</mosaic_0001>

<bundles_post_ra>
// kernel: tile.9
= control target key start
LH: loop header
LB: loop body
LE: loop exit
PB: predicated region body
PF: predicated region fallthrough
CT: control target
= control target key end

     0   :  { %vm82_vm0 = vcmask 850944   ;;  %s296_s0 = inlined_call_operand.vmem [shape: f32[2,3,1000], index: 0, kind: input, shape index: {}]   ;;  %s297_s1 = inlined_call_operand.vmem [shape: f32[6,1000], index: 1, kind: output, shape index: {}]  }
   0x1   :  { %v158_v0 = vld [vmem:[%s296_s0 + $0x3c] sm:$0xf]  ;;  %v159_v1 = vld [vmem:[%s296_s0 + $0x38] sm:$0xf]  ;;  %v160_v2 = vld [vmem:[%s296_s0 + $0x34] sm:$0xf] }
   0x2   :  { %8 = vst [vmem:[#allocation0 + $0x78] sm:$0xf] %v158_v0  ;;  %13 = vst [vmem:[#allocation0 + $0x70] sm:$0xf] %v159_v1  ;;  %v161_v3 = vld [vmem:[%s296_s0 + $0x30] sm:$0xf] }
   0x3   :  { %18 = vst [vmem:[#allocation0 + $0x68] sm:$0xf] %v160_v2  ;;  %v162_v4 = vld [vmem:[%s296_s0 + $0x2c] sm:$0xf]  ;;  %v163_v5 = vld [vmem:[%s296_s0 + $0x28] sm:$0xf] }
   0x4   :  { %23 = vst [vmem:[#allocation0 + $0x60] sm:$0xf] %v161_v3  ;;  %28 = vst [vmem:[#allocation0 + $0x58] sm:$0xf] %v162_v4  ;;  %v164_v6 = vld [vmem:[%s296_s0 + $0x24] sm:$0xf] }
   0x5   :  { %33 = vst [vmem:[#allocation0 + $0x50] sm:$0xf] %v163_v5  ;;  %v165_v7 = vld [vmem:[%s296_s0 + $0x20] sm:$0xf]  ;;  %v166_v8 = vld [vmem:[%s296_s0 + $0x1c] sm:$0xf] }
   0x6   :  { %38 = vst [vmem:[#allocation0 + $0x48] sm:$0xf] %v164_v6  ;;  %43 = vst [vmem:[#allocation0 + $0x40] sm:$0xf] %v165_v7  ;;  %v167_v9 = vld [vmem:[%s296_s0 + $0x18] sm:$0xf] }
   0x7   :  { %48 = vst [vmem:[#allocation0 + $0x38] sm:$0xf] %v166_v8  ;;  %v168_v10 = vld [vmem:[%s296_s0 + $0x14] sm:$0xf]  ;;  %v169_v11 = vld [vmem:[%s296_s0 + $0x10] sm:$0xf] }
   0x8   :  { %53 = vst [vmem:[#allocation0 + $0x30] sm:$0xf] %v167_v9  ;;  %58 = vst [vmem:[#allocation0 + $0x28] sm:$0xf] %v168_v10  ;;  %v170_v12 = vld [vmem:[%s296_s0 + $0xc] sm:$0xf] }
   0x9   :  { %63 = vst [vmem:[#allocation0 + $0x20] sm:$0xf] %v169_v11  ;;  %v171_v13 = vld [vmem:[%s296_s0 + $0x8] sm:$0xf]  ;;  %v172_v14 = vld [vmem:[%s296_s0 + $0x4] sm:$0xf] }
   0xa   :  { %68 = vst [vmem:[#allocation0 + $0x18] sm:$0xf] %v170_v12  ;;  %73 = vst [vmem:[#allocation0 + $0x10] sm:$0xf] %v171_v13  ;;  %v78_v15 = vld [vmem:[%s296_s0] sm:$0xf] }
   0xb   :  { %77 = vst [vmem:[#allocation0 + $0x8] sm:$0xf] %v172_v14  ;;  %79 = vst [vmem:[#allocation0] sm:$0xf] %v78_v15  ;;  %v86_v16 = vld [vmem:[#allocation0 + $0x78] sm:$0x7]  }
   0xc   :  { %v137_v17 = vld [vmem:[#allocation0 + $0x68] sm:$0x7]   ;;  %v141_v18 = vld [vmem:[#allocation0 + $0x70] sm:$0x7]   ;;  %174 = vst.msk [vmem:[%s297_s1 + $0x3b] sm:$0x7] %vm82_vm0, %v86_v16  }
   0xd   :  { %v125_v19 = vld [vmem:[#allocation0 + $0x50] sm:$0x7]   ;;  %v129_v20 = vld [vmem:[#allocation0 + $0x58] sm:$0x7]   ;;  %v133_v21 = vld [vmem:[#allocation0 + $0x60] sm:$0x7]  }
   0xe   :  { %186 = vst [vmem:[%s297_s1 + $0x2b] sm:$0x7] %v137_v17   ;;  %187 = vst [vmem:[%s297_s1 + $0x33] sm:$0x7] %v141_v18   ;;  %v81_v22 = vld [vmem:[#allocation0 + $0x38] sm:$0x7]  }
   0xf   :  { %v117_v23 = vld [vmem:[#allocation0 + $0x40] sm:$0x7]   ;;  %v121_v24 = vld [vmem:[#allocation0 + $0x48] sm:$0x7]   ;;  %183 = vst [vmem:[%s297_s1 + $0x13] sm:$0x7] %v125_v19  }
  0x10   :  { %184 = vst [vmem:[%s297_s1 + $0x1b] sm:$0x7] %v129_v20   ;;  %185 = vst [vmem:[%s297_s1 + $0x23] sm:$0x7] %v133_v21   ;;  %v105_v25 = vld [vmem:[#allocation0 + $0x20] sm:$0x7]  }
  0x11   :  { %173 = vst.msk [vmem:[%s297_s1 + $0x38] sm:$0x7] %vm82_vm0, %v81_v22   ;;  %v109_v26 = vld [vmem:[#allocation0 + $0x28] sm:$0x7]   ;;  %v113_v27 = vld [vmem:[#allocation0 + $0x30] sm:$0x7]  }
  0x12   :  { %181 = vst [vmem:[%s297_s1 + $0x3] sm:$0x7] %v117_v23   ;;  %182 = vst [vmem:[%s297_s1 + $0xb] sm:$0x7] %v121_v24   ;;  %v93_v28 = vld [vmem:[#allocation0 + $0x8] sm:$0x7]  }
  0x13   :  { %v97_v29 = vld [vmem:[#allocation0 + $0x10] sm:$0x7]   ;;  %v101_v30 = vld [vmem:[#allocation0 + $0x18] sm:$0x7]   ;;  %178 = vst [vmem:[%s297_s1 + $0x20] sm:$0x7] %v105_v25  }
  0x14   :  { %179 = vst [vmem:[%s297_s1 + $0x28] sm:$0x7] %v109_v26   ;;  %180 = vst [vmem:[%s297_s1 + $0x30] sm:$0x7] %v113_v27   ;;  %v90_v31 = vld [vmem:[#allocation0] sm:$0x7]  }
  0x15   :  { %175 = vst [vmem:[%s297_s1 + $0x8] sm:$0x7] %v93_v28   ;;  %176 = vst [vmem:[%s297_s1 + $0x10] sm:$0x7] %v97_v29  }
  0x16   :  { %177 = vst [vmem:[%s297_s1 + $0x18] sm:$0x7] %v101_v30   ;;  %91 = vst [vmem:[%s297_s1] sm:$0x7] %v90_v31  }

// kernel: multi_concat_forward.1
= control target key start
LH: loop header
LB: loop body
LE: loop exit
PB: predicated region body
PF: predicated region fallthrough
CT: control target
= control target key end

     0   :  { %vm27_vm0 = vcmask 1045504   ;;  %s615_s0 = inlined_call_operand.vmem [shape: f32[6,256], index: 0, kind: input, shape index: {}]   ;;  %s616_s1 = inlined_call_operand.vmem [shape: f32[6,1000], index: 1, kind: input, shape index: {}]   ;;  %s617_s2 = inlined_call_operand.vmem [shape: f32[2,6], index: 2, kind: input, shape index: {}]   ;;  %s618_s3 = inlined_call_operand.vmem [shape: f32[1,1000], index: 3, kind: input, shape index: {}]   ;;  %s619_s4 = inlined_call_operand.hbm [shape: f32[2,1000], index: 4, kind: output, shape index: {}]  }
   0x1   :  { %v25_v0 = vld [vmem:[%s615_s0] sm:$0x3f]  ;;  %v26_v1 = vld [vmem:[%s615_s0 + $0x8] sm:$0x3f] }
   0x2   :  { %v28_v2 = vsel %vm27_vm0, %v25_v0, 0.0  ;;  %v29_v3 = vsel %vm27_vm0, %v26_v1, 0.0 }
   0x3   :  { %9 = vsyncpa [#allocation4], 0  ;;  %v30_v4 = vadd.f32 %v29_v3, %v28_v2  ;;  %vm22_vm1 = vcmask 5120   ;;  %v524_v5 = vmov 0.0   ;;  %v525_v6 = vmov 0   ;;  %v62_v35 = vld [vmem:[%s618_s3] sm:$0xff] }
   0x4   :  { %23 = vst.msk [vmem:[#allocation2] sm:$0x3f] %vm22_vm1, %v524_v5  ;;  %196 = vmatprep.mubr.f32.mxu0 %v524_v5  ;;  %267 = vmatprep.mubr.f32.mxu1 %v524_v5  ;;  %v41_v11 = vld [vmem:[%s616_s1 + $0x8] sm:$0x3f]  ;;  %v43_v12 = vld [vmem:[%s616_s1 + $0x18] sm:$0x3f]  ;;  %v64_v29 = vlaneseq }
   0x5   :  { %31 = vadd.xlane.f32.xlu0 %v30_v4  ;;  %v40_v13 = vld [vmem:[%s616_s1] sm:$0x3f]  ;;  %v42_v14 = vld [vmem:[%s616_s1 + $0x10] sm:$0x3f]  ;;  %v45_v20 = vld [vmem:[%s616_s1 + $0x28] sm:$0x3f] }
   0x6   :  { %499 = vset.pattern.permute.xlu0 %v525_v6  ;;  %v47_v21 = vld [vmem:[%s616_s1 + $0x38] sm:$0x3f]  ;;  %v44_v22 = vld [vmem:[%s616_s1 + $0x20] sm:$0x3f]  ;;  %vm104_vm2 = vcmask 48128   ;;  %v65_v30 = vshrl.u32 %v64_v29, 7 }
   0x7   :  { %v61_v23 = vld [vmem:[%s617_s2] sm:$0x3]  ;;  %v46_v24 = vld [vmem:[%s616_s1 + $0x30] sm:$0x3f]  ;;  %v526_v31 = vmov 1983009808  }
   0x8   :  { %v427_v32 = vunpack.c.l.s4 %v526_v31  ;;  %v66_v33 = vsub.s32 0, %v65_v30  ;;  %v74_v34 = vsub.s32 2, %v65_v30  ;;  %v70_v36 = vsub.s32 1, %v65_v30  ;;  %s527_s3 = smov [#allocation3]  }
   0x9   :  { %v78_v37 = vsub.s32 3, %v65_v30  ;;  %v82_v39 = vsub.s32 4, %v65_v30  ;;  %v90_v40 = vsub.s32 6, %v65_v30  ;;  %v86_v43 = vsub.s32 5, %v65_v30  ;;  %s475_s10 = sshll.u32 %s527_s3, 4  ;;  %s476_s10 = int_to_ptr.vmem [resolvable:$true] %s475_s10 }
   0xa   :  { %v428_v38 = vunpack.c.0.s8 %v427_v32  ;;  %v67_v41 = vrot.slane %v62_v35, %v66_v33  ;;  %v75_v42 = vrot.slane %v62_v35, %v74_v34  ;;  %v94_v44 = vsub.s32 7, %v65_v30  ;;  %s500_s11 = scalar_lea.vmem %s476_s10, 256  ;;  %p505_p1 = scmp.lt.s32.totalorder %s476_s10, %s476_s10 }
   0xb   :  { %v24_v7 = vld [vmem:[#allocation2] sm:$0x3f]  ;;  %v71_v45 = vrot.slane %v62_v35, %v70_v36  ;;  %v79_v46 = vrot.slane %v62_v35, %v78_v37  ;;  %v83_v50 = vrot.slane %v62_v35, %v82_v39  ;;  %v91_v51 = vrot.slane %v62_v35, %v90_v40  ;;  %p501_p0 = scmp.ne.s32.totalorder %s476_s10, %s500_s11  ;;  %p506_p2 = scmp.lt.s32.totalorder %s500_s11, %s500_s11 }
   0xc   :  { %v431_v49 = vsub.s32 %v428_v38, %v65_v30  ;;  %v87_v56 = vrot.slane %v62_v35, %v86_v43  ;;  %v95_v57 = vrot.slane %v62_v35, %v94_v44  ;;  %vm461_vm3 = vcmask 1041408  }
   0xd   :  { %vm462_vm4 = vcmask 1043458   ;;  %vm464_vm6 = vcmask 1045508   ;;  %vm466_vm8 = vcmask 850950   ;;  %p507_p3 = por %p506_p2, %p505_p1 }
   0xe   :  { %vm463_vm5 = vmor %vm462_vm4, %vm461_vm3 }
   0xf   :  { %vm465_vm7 = vmor %vm464_vm6, %vm463_vm5  ;;  %p508_p4 = pnand %p507_p3, %p501_p0 }
  0x10   :  { %vm467_vm9 = vmor %vm466_vm8, %vm465_vm7 }
  0x92   :  { %v32_v8 = vpop.xlane.xlu0 %31 }
  0x93   :  { %v33_v9 = vadd.f32 %v32_v8, %v24_v7 }
  0x95   :  { %35 = vst.msk [vmem:[#allocation2] sm:$0x3f] %vm22_vm1, %v33_v9 }
  0x9c   :  { %v39_v10 = vld [vmem:[#allocation2] sm:$0x3f] }
  0x9d   :  { %50 = vperm.xlu0 %499, %v39_v10  }
 0x11c   :  { %v51_v15 = vpop.permute.xlu0 %50 }
 0x11d   :  { %v54_v16 = vmul.f32 %v51_v15, %v41_v11  ;;  %v56_v17 = vmul.f32 %v51_v15, %v43_v12  ;;  %v53_v18 = vmul.f32 %v51_v15, %v40_v13  ;;  %v55_v19 = vmul.f32 %v51_v15, %v42_v14 }
 0x11e   :  { %v58_v25 = vmul.f32 %v51_v15, %v45_v20  ;;  %v60_v26 = vmul.f32 %v51_v15, %v47_v21  ;;  %v57_v27 = vmul.f32 %v51_v15, %v44_v22  ;;  %v59_v28 = vmul.f32 %v51_v15, %v46_v24 }
 0x11f   :  { %483 = vmatprep.subr.msk.mxu0 %vm27_vm0, %v54_v16  ;;  %486 = vmatprep.subr.msk.mxu1 %vm27_vm0, %v56_v17 }
 0x120   :  { %484 = vmatpush1.msk.msra.mxu0 %vm27_vm0, %v53_v18  ;;  %487 = vmatpush1.msk.msra.mxu1 %vm27_vm0, %v55_v19 }
 0x121   :  { %485 = vmatmul.mubr.msk.f32.vlgmr.msra.gmra.mrb[0].mxu0 %vm104_vm2, %v61_v23  ;;  %488 = vmatmul.mubr.msk.f32.vlgmr.msra.gmra.mrb[0].mxu1 %vm104_vm2, %v61_v23 }
 0x122   :  { %489 = vmatprep.subr.msk.mxu0 %vm27_vm0, %v58_v25  ;;  %492 = vmatprep.subr.msk.mxu1 %vm27_vm0, %v60_v26 }
 0x123   :  { %490 = vmatpush1.msk.msra.mxu0 %vm27_vm0, %v57_v27  ;;  %493 = vmatpush1.msk.msra.mxu1 %vm27_vm0, %v59_v28 }
 0x124   :  { %338 = vmatprep.mubr.f32.mxu0 %v524_v5  ;;  %409 = vmatprep.mubr.f32.mxu1 %v524_v5 }
 0x125   :  { %491 = vmatmul.mubr.msk.f32.vlgmr.msra.gmra.mrb[2].mxu0 %vm104_vm2, %v61_v23  ;;  %494 = vmatmul.mubr.msk.f32.vlgmr.msra.gmra.mrb[2].mxu1 %vm104_vm2, %v61_v23 }
 0x1f4   :  { %v198_v47 = vpop.f32.mrb[0].mxu0  ;;  %v269_v48 = vpop.f32.mrb[0].mxu1 }
 0x1f5   :  { %v199_v52 = vadd.f32 %v198_v47, %v67_v41  ;;  %v270_v53 = vadd.f32 %v269_v48, %v75_v42  ;;  %v200_v54 = vpop.f32.mrb[1].mxu0  ;;  %v271_v55 = vpop.f32.mrb[1].mxu1 }
 0x1f6   :  { %v201_v58 = vadd.f32 %v200_v54, %v71_v45  ;;  %v272_v59 = vadd.f32 %v271_v55, %v79_v46 }
 0x1f8   :  { %v424_v60 = vcombine.low %v199_v52, %v201_v58  ;;  %v425_v61 = vcombine.low %v270_v53, %v272_v59  ;;  %v340_v62 = vpop.f32.mrb[2].mxu0  ;;  %v411_v63 = vpop.f32.mrb[2].mxu1 }
 0x1f9   :  { %v341_v0 = vadd.f32 %v340_v62, %v83_v50  ;;  %v412_v1 = vadd.f32 %v411_v63, %v91_v51  ;;  %v342_v2 = vpop.f32.mrb[3].mxu0  ;;  %v413_v3 = vpop.f32.mrb[3].mxu1 }
 0x1fa   :  { %v432_v4 = vrot.slane %v424_v60, %v431_v49  ;;  %v439_v5 = vrot.slane %v425_v61, %v431_v49  ;;  %v343_v6 = vadd.f32 %v342_v2, %v87_v56  ;;  %v414_v7 = vadd.f32 %v413_v3, %v95_v57 }
 0x1fc   :  { %v441_v8 = vcombine.low %v341_v0, %v343_v6  ;;  %v442_v9 = vcombine.low %v412_v1, %v414_v7  ;;  %v440_v10 = vcombine.low %v432_v4, %v439_v5 }
 0x1fe   :  { %v449_v11 = vrot.slane %v441_v8, %v431_v49  ;;  %v456_v12 = vrot.slane %v442_v9, %v431_v49  ;;  %460 = vst [vmem:[#allocation3] sm:$0xff] %v440_v10 }
 0x200   :  { %v457_v13 = vcombine.low %v449_v11, %v456_v12 }
 0x202   :  { %468 = vst.msk [vmem:[#allocation3 + $0x8] sm:$0xff] %vm467_vm9, %v457_v13 }
 0x203   :  { %511 = shalt.err (!%p508_p4)
}
 0x204   :  { %s512_s14 = scalar_lea.hbm %s619_s4, 256 }
 0x205   :  { %p513_p5 = scmp.ne.s32.totalorder %s619_s4, %s512_s14  ;;  %p516_p6 = scmp.lt.u32.totalorder %s512_s14, %s619_s4 }
 0x207   :  { %p518_p7 = pnand %p516_p6, %p513_p5 }
 0x209   :  { %521 = shalt.err (!%p518_p7)
}
 0x20a   :  { %478 = dma.vmem_to_hbm [thread:$0]  %s476_s10, 256, %s619_s4, [#allocation4]  }
 0x20b   :  { %522 = dma.done.wait [#allocation4], 256  }
 0x20c   :  { %523 = vsyncadd [#allocation4], 4294967040 }
 0x20d   :  { %482 = vsyncpa [#allocation4], 1 }

</bundles_post_ra>
